<compile_context>
chip_gen: v5e
topology: v5e:2x2
jax: 0.10.0
libtpu: 0.0.40
codegen_flags: <defaults>
</compile_context>

<pallas_src>
import jax
import jax.numpy as jnp
from jax.experimental import pallas as pl
from jax.experimental.pallas import tpu as pltpu


def admm_kernel(tau_ref, ilbar_ref, ig1_ref, ig3_ref,   # (1, L) f32 in SMEM
                ainv_ref, hty_ref, xini_ref, xt_ref,     # VMEM blocks
                x_out_ref, loss_ref,                     # outputs
                z_sc, u_sc):                             # VMEM scratch (carried over l)
    l = pl.program_id(1)
    last = pl.num_programs(1) - 1

    @pl.when(l == 0)
    def _init():
        x0 = xini_ref[0]              # (Bb, N)
        z_sc[...] = x0
        u_sc[...] = jnp.zeros_like(x0)

    tau = tau_ref[0, l]
    ilbar = ilbar_ref[0, l]
    inv_g1 = ig1_ref[0, l]            # 0.5 / gamma1[l]
    inv_g3 = ig3_ref[0, l]            # 0.5 / gamma3[l]
    c3 = 2.0 * inv_g3

    z = z_sc[...]                     # (Bb, N) lane-major
    u = u_sc[...]

    # rhs = H^T y + u + tau * z
    rhs = hty_ref[0] + u + tau * z                                   # (Bb, N)

    # x = Ainv_l @ rhs  (row form; contract last dims -> MXU-native A.B^T)
    x = jnp.einsum('bon,bmn->bom', rhs[:, None, :], ainv_ref[0],
                   preferred_element_type=jnp.float32)[:, 0, :]      # (Bb, N)

    temp = x - u * ilbar
    a1 = temp * inv_g1
    a3 = temp * inv_g3
    z_new = jnp.tanh(a1) + jnp.tanh(a3 - c3) + jnp.tanh(a3 + c3)
    u_new = u + tau * (z_new - x)

    z_sc[...] = z_new
    u_sc[...] = u_new

    @pl.when(l == last)
    def _finalize():
        x_out_ref[0] = x.astype(x_out_ref.dtype)
        xt = xt_ref[0]
        dx = x - xt
        dz = z_new - xt
        # Per-batch-element partial loss; summed outside (keeps batch axis parallel).
        loss_ref[0] = (jnp.sum(dx * dx, axis=1, keepdims=True)
                       + jnp.sum(dz * dz, axis=1, keepdims=True))


def admm_forward(x_ini, y, H, xt, tau, ilbar, g1, g3, *, block_b=None):
    B, M, N = H.shape
    L = int(tau.shape[0])
    f32 = jnp.float32

    if block_b is None:
        # Largest divisor of B whose double-buffered Ainv tile fits a ~6 MiB budget
        # (safe under v5e's 16 MiB default scoped VMEM, v6e/v7x 32 MiB).
        vmem_budget = 6 * 1024 * 1024
        cap = max(1, vmem_budget // (2 * N * N * 4))
        cap = int(min(cap, B, 128))
        block_b = 1
        for d in range(1, cap + 1):
            if B % d == 0:
                block_b = d
    assert B % block_b == 0, "block_b must divide B"
    G = B // block_b

    Hf = H.astype(f32)
    yf = y.astype(f32)
    Ht = jnp.swapaxes(Hf, 1, 2)
    HTH = Ht @ Hf                              # (B, N, N)
    HTy = (Ht @ yf)[..., 0]                    # (B, N)

    tauf = tau.astype(f32)
    eye = jnp.eye(N, dtype=f32)
    # Per-layer inverses, exactly as the PyTorch module (torch.linalg.inv).
    # TODO(synk): no Pallas matrix-inverse primitive; computed in XLA.
    Ainv = jnp.linalg.inv(HTH[:, None, :, :]
                          + tauf[None, :, None, None] * eye)          # (B, L, N, N)
    # Arrange so the flat leading index is g*L + l  (matches the grid index_map).
    Ainv = (Ainv.reshape(G, block_b, L, N, N)
                .transpose(0, 2, 1, 3, 4)
                .reshape(G * L, block_b, N, N))

    HTyb = HTy.reshape(G, block_b, N)
    xinib = x_ini.astype(f32)[..., 0].reshape(G, block_b, N)
    xtb = xt.astype(f32)[..., 0].reshape(G, block_b, N)

    tau2 = tauf.reshape(1, L)
    ilbar2 = ilbar.astype(f32).reshape(1, L)
    ig12 = (0.5 / g1.astype(f32)).reshape(1, L)
    ig32 = (0.5 / g3.astype(f32)).reshape(1, L)

    smem_spec = pl.BlockSpec(memory_space=pltpu.MemorySpace.SMEM)

    grid_spec = pltpu.PrefetchScalarGridSpec(
        num_scalar_prefetch=0,
        grid=(G, L),
        in_specs=[
            smem_spec, smem_spec, smem_spec, smem_spec,
            pl.BlockSpec((1, block_b, N, N), lambda g, l: (g * L + l, 0, 0, 0)),  # Ainv_l
            pl.BlockSpec((1, block_b, N), lambda g, l: (g, 0, 0)),                # HTy
            pl.BlockSpec((1, block_b, N), lambda g, l: (g, 0, 0)),                # x_ini
            pl.BlockSpec((1, block_b, N), lambda g, l: (g, 0, 0)),                # xt
        ],
        out_specs=[
            pl.BlockSpec((1, block_b, N), lambda g, l: (g, 0, 0)),                # x
            pl.BlockSpec((1, block_b, 1), lambda g, l: (g, 0, 0)),                # loss parts
        ],
        scratch_shapes=[
            pltpu.VMEM((block_b, N), f32),   # z carried across layers
            pltpu.VMEM((block_b, N), f32),   # u carried across layers
        ],
    )

    x_blk, loss_parts = pl.pallas_call(
        admm_kernel,
        out_shape=(
            jax.ShapeDtypeStruct((G, block_b, N), f32),
            jax.ShapeDtypeStruct((G, block_b, 1), f32),
        ),
        grid_spec=grid_spec,
        compiler_params=pltpu.CompilerParams(
            dimension_semantics=("parallel", "arbitrary")),
    )(tau2, ilbar2, ig12, ig32, Ainv, HTyb, xinib, xtb)

    x_out = x_blk.reshape(B, N, 1)
    loss = jnp.sum(loss_parts).reshape(1, 1)
    return x_out, loss


def admm_reference(x_ini, y, H, xt, tau, ilbar, g1, g3):
    """Pure-JAX reference matching the PyTorch forward."""
    L = tau.shape[0]
    N = H.shape[-1]
    x = x_ini
    z = x_ini
    u = jnp.zeros_like(x_ini)
    Ht = jnp.swapaxes(H, 1, 2)
    HTH = Ht @ H
    HTy = Ht @ y
    eye = jnp.eye(N, dtype=jnp.float32)
    for l in range(L):
        temp1 = HTH + tau[l] * eye
        temp2 = HTy + u + tau[l] * z
        x = jnp.linalg.solve(temp1, temp2)
        temp = x - u * ilbar[l]
        z = (jnp.tanh(temp / g1[l] * 0.5)
             + jnp.tanh((temp - 2.0) / g3[l] * 0.5)
             + jnp.tanh((temp + 2.0) / g3[l] * 0.5))
        u = u + tau[l] * (z - x)
    dx = x - xt
    dz = z - xt
    loss = (jnp.sum(jnp.swapaxes(dx, 1, 2) @ dx, axis=0)
            + jnp.sum(jnp.swapaxes(dz, 1, 2) @ dz, axis=0))
    return x, loss


if __name__ == "__main__":
    # Small shapes consistent with the module (original: M=100, N=80, bs=500).
    B, M, N, L = 8, 24, 16, 3

    key = jax.random.PRNGKey(0)
    k1, k2, k3 = jax.random.split(key, 3)
    H = jax.random.normal(k1, (B, M, N), dtype=jnp.float32) / jnp.sqrt(float(M))
    xt = jax.random.normal(k2, (B, N, 1), dtype=jnp.float32)
    y = jnp.matmul(H, xt) + 0.1 * jax.random.normal(k3, (B, M, 1), dtype=jnp.float32)
    x_ini = jnp.zeros((B, N, 1), dtype=jnp.float32)

    # Deterministic parameter init exactly as in ADMM.__init__ .
    ILbar = jnp.full((L,), 1.0 / 250.0, dtype=jnp.float32)
    tau = jnp.full((L,), 250.0, dtype=jnp.float32)
    gamma1 = jnp.array([0.48 - (0.48 - 0.001) / L * i for i in range(L)],
                       dtype=jnp.float32)
    gamma3 = jnp.array([0.48 - (0.48 - 0.001) / L * i for i in range(L)],
                       dtype=jnp.float32)

    # block_b=4 -> grid of (2, 3): exercises batch-parallel axis + layer carry.
    x_out, loss = admm_forward(x_ini, y, H, xt, tau, ILbar, gamma1, gamma3,
                               block_b=4)
    jax.block_until_ready((x_out, loss))

    x_ref, loss_ref_v = admm_reference(x_ini, y, H, xt, tau, ILbar, gamma1, gamma3)

    assert x_out.shape == (B, N, 1) and loss.shape == (1, 1)
    assert jnp.allclose(x_out, x_ref, rtol=1e-3, atol=1e-3), "x mismatch"
    assert jnp.allclose(loss, loss_ref_v, rtol=1e-3, atol=1e-3), "loss mismatch"

    print("KERNEL_OK")
</pallas_src>

<mosaic_0001>
module attributes {stable_mosaic.version = 11 : i64} {
  func.func @admm_kernel(%arg0: i32, %arg1: i32, %arg2: memref<1x3xf32, #tpu.memory_space<smem>>, %arg3: memref<1x3xf32, #tpu.memory_space<smem>>, %arg4: memref<1x3xf32, #tpu.memory_space<smem>>, %arg5: memref<1x3xf32, #tpu.memory_space<smem>>, %arg6: memref<1x4x16x16xf32, #tpu.memory_space<vmem>>, %arg7: memref<1x4x16xf32, #tpu.memory_space<vmem>>, %arg8: memref<1x4x16xf32, #tpu.memory_space<vmem>>, %arg9: memref<1x4x16xf32, #tpu.memory_space<vmem>>, %arg10: memref<1x4x16xf32, #tpu.memory_space<vmem>>, %arg11: memref<1x4x1xf32, #tpu.memory_space<vmem>>, %arg12: memref<4x16xf32, #tpu.memory_space<vmem>>, %arg13: memref<4x16xf32, #tpu.memory_space<vmem>>) attributes {dimension_semantics = [#tpu.dimension_semantics<parallel>, #tpu.dimension_semantics<arbitrary>], iteration_bounds = array<i64: 2, 3>, scalar_prefetch = 0 : i64, scratch_operands = 2 : i64, tpu.core_type = #tpu.core_type<tc>, window_params = [{transform_indices = @transform_0, window_bounds = array<i64: 1, 3>}, {transform_indices = @transform_1, window_bounds = array<i64: 1, 3>}, {transform_indices = @transform_2, window_bounds = array<i64: 1, 3>}, {transform_indices = @transform_3, window_bounds = array<i64: 1, 3>}, {transform_indices = @transform_4, window_bounds = array<i64: 1, 4, 16, 16>}, {transform_indices = @transform_5, window_bounds = array<i64: 1, 4, 16>}, {transform_indices = @transform_6, window_bounds = array<i64: 1, 4, 16>}, {transform_indices = @transform_7, window_bounds = array<i64: 1, 4, 16>}, {transform_indices = @transform_8, window_bounds = array<i64: 1, 4, 16>}, {transform_indices = @transform_9, window_bounds = array<i64: 1, 4, 1>}]} {
    %c0_i32 = arith.constant 0 : i32
    %0 = arith.cmpi eq, %arg1, %c0_i32 : i32
    %1 = arith.extui %0 : i1 to i32
    %c0_i32_0 = arith.constant 0 : i32
    %2 = arith.cmpi ne, %1, %c0_i32_0 : i32
    scf.if %2 {
      %c0_21 = arith.constant 0 : index
      %c0_22 = arith.constant 0 : index
      %c0_23 = arith.constant 0 : index
      %50 = vector.load %arg8[%c0_21, %c0_22, %c0_23] : memref<1x4x16xf32, #tpu.memory_space<vmem>>, vector<1x4x16xf32>
      %51 = vector.shape_cast %50 : vector<1x4x16xf32> to vector<4x16xf32>
      %c0_24 = arith.constant 0 : index
      %c0_25 = arith.constant 0 : index
      %52 = vector.load %arg12[%c0_24, %c0_25] : memref<4x16xf32, #tpu.memory_space<vmem>>, vector<4x16xf32>
      tpu.vector_store %arg12[%c0_24, %c0_25], %51 {strides = array<i32>} : memref<4x16xf32, #tpu.memory_space<vmem>>, vector<4x16xf32>,
      %cst_26 = arith.constant 0.000000e+00 : f32
      %53 = vector.broadcast %cst_26 : f32 to vector<4x16xf32>
      %c0_27 = arith.constant 0 : index
      %c0_28 = arith.constant 0 : index
      %54 = vector.load %arg13[%c0_27, %c0_28] : memref<4x16xf32, #tpu.memory_space<vmem>>, vector<4x16xf32>
      tpu.vector_store %arg13[%c0_27, %c0_28], %53 {strides = array<i32>} : memref<4x16xf32, #tpu.memory_space<vmem>>, vector<4x16xf32>,
    } else {
    }
    %c0 = arith.constant 0 : index
    %3 = arith.index_cast %arg1 : i32 to index
    %4 = memref.load %arg2[%c0, %3] : memref<1x3xf32, #tpu.memory_space<smem>>
    %c0_1 = arith.constant 0 : index
    %5 = arith.index_cast %arg1 : i32 to index
    %6 = memref.load %arg3[%c0_1, %5] : memref<1x3xf32, #tpu.memory_space<smem>>
    %c0_2 = arith.constant 0 : index
    %7 = arith.index_cast %arg1 : i32 to index
    %8 = memref.load %arg4[%c0_2, %7] : memref<1x3xf32, #tpu.memory_space<smem>>
    %c0_3 = arith.constant 0 : index
    %9 = arith.index_cast %arg1 : i32 to index
    %10 = memref.load %arg5[%c0_3, %9] : memref<1x3xf32, #tpu.memory_space<smem>>
    %cst = arith.constant 2.000000e+00 : f32
    %11 = arith.mulf %cst, %10 : f32
    %c0_4 = arith.constant 0 : index
    %c0_5 = arith.constant 0 : index
    %12 = vector.load %arg12[%c0_4, %c0_5] : memref<4x16xf32, #tpu.memory_space<vmem>>, vector<4x16xf32>
    %c0_6 = arith.constant 0 : index
    %c0_7 = arith.constant 0 : index
    %13 = vector.load %arg13[%c0_6, %c0_7] : memref<4x16xf32, #tpu.memory_space<vmem>>, vector<4x16xf32>
    %c0_8 = arith.constant 0 : index
    %c0_9 = arith.constant 0 : index
    %c0_10 = arith.constant 0 : index
    %14 = vector.load %arg7[%c0_8, %c0_9, %c0_10] : memref<1x4x16xf32, #tpu.memory_space<vmem>>, vector<1x4x16xf32>
    %15 = vector.shape_cast %14 : vector<1x4x16xf32> to vector<4x16xf32>
    %16 = arith.addf %15, %13 : vector<4x16xf32>
    %17 = vector.broadcast %4 : f32 to vector<4x16xf32>
    %18 = arith.mulf %17, %12 : vector<4x16xf32>
    %19 = arith.addf %16, %18 : vector<4x16xf32>
    %20 = vector.shape_cast %19 : vector<4x16xf32> to vector<4x1x16xf32>
    %c0_11 = arith.constant 0 : index
    %c0_12 = arith.constant 0 : index
    %c0_13 = arith.constant 0 : index
    %c0_14 = arith.constant 0 : index
    %21 = vector.load %arg6[%c0_11, %c0_12, %c0_13, %c0_14] : memref<1x4x16x16xf32, #tpu.memory_space<vmem>>, vector<1x4x16x16xf32>
    %22 = vector.shape_cast %21 : vector<1x4x16x16xf32> to vector<4x16x16xf32>
    "tpu.trace_start"() <{level = 10 : i32, message = "bon,bmn->bom"}> : () -> ()
    %cst_15 = arith.constant dense<0.000000e+00> : vector<4x1x16xf32>
    %23 = tpu.matmul %20, %22, %cst_15 {dimension_numbers = #tpu.dot_dimension_numbers<[2], [2], [1], [1], [0, 0, 0, 1, 1, 1], [0], [0]>} : vector<4x1x16xf32>, vector<4x16x16xf32>, vector<4x1x16xf32> -> vector<4x1x16xf32>
    "tpu.trace_stop"() : () -> ()
    %24 = vector.shape_cast %23 : vector<4x1x16xf32> to vector<4x16xf32>
    %25 = vector.broadcast %6 : f32 to vector<4x16xf32>
    %26 = arith.mulf %13, %25 : vector<4x16xf32>
    %27 = arith.subf %24, %26 : vector<4x16xf32>
    %28 = vector.broadcast %8 : f32 to vector<4x16xf32>
    %29 = arith.mulf %27, %28 : vector<4x16xf32>
    %30 = vector.broadcast %10 : f32 to vector<4x16xf32>
    %31 = arith.mulf %27, %30 : vector<4x16xf32>
    %32 = math.tanh %29 : vector<4x16xf32>
    %33 = vector.broadcast %11 : f32 to vector<4x16xf32>
    %34 = arith.subf %31, %33 : vector<4x16xf32>
    %35 = math.tanh %34 : vector<4x16xf32>
    %36 = arith.addf %32, %35 : vector<4x16xf32>
    %37 = vector.broadcast %11 : f32 to vector<4x16xf32>
    %38 = arith.addf %31, %37 : vector<4x16xf32>
    %39 = math.tanh %38 : vector<4x16xf32>
    %40 = arith.addf %36, %39 : vector<4x16xf32>
    %41 = arith.subf %40, %24 : vector<4x16xf32>
    %42 = vector.broadcast %4 : f32 to vector<4x16xf32>
    %43 = arith.mulf %42, %41 : vector<4x16xf32>
    %44 = arith.addf %13, %43 : vector<4x16xf32>
    %c0_16 = arith.constant 0 : index
    %c0_17 = arith.constant 0 : index
    %45 = vector.load %arg12[%c0_16, %c0_17] : memref<4x16xf32, #tpu.memory_space<vmem>>, vector<4x16xf32>
    tpu.vector_store %arg12[%c0_16, %c0_17], %40 {strides = array<i32>} : memref<4x16xf32, #tpu.memory_space<vmem>>, vector<4x16xf32>,
    %c0_18 = arith.constant 0 : index
    %c0_19 = arith.constant 0 : index
    %46 = vector.load %arg13[%c0_18, %c0_19] : memref<4x16xf32, #tpu.memory_space<vmem>>, vector<4x16xf32>
    tpu.vector_store %arg13[%c0_18, %c0_19], %44 {strides = array<i32>} : memref<4x16xf32, #tpu.memory_space<vmem>>, vector<4x16xf32>,
    %c2_i32 = arith.constant 2 : i32
    %47 = arith.cmpi eq, %arg1, %c2_i32 : i32
    %48 = arith.extui %47 : i1 to i32
    %c0_i32_20 = arith.constant 0 : i32
    %49 = arith.cmpi ne, %48, %c0_i32_20 : i32
    scf.if %49 {
      %c0_21 = arith.constant 0 : index
      %c0_22 = arith.constant 0 : index
      %c0_23 = arith.constant 0 : index
      %50 = vector.load %arg10[%c0_21, %c0_22, %c0_23] : memref<1x4x16xf32, #tpu.memory_space<vmem>>, vector<1x4x16xf32>
      %51 = vector.shape_cast %50 : vector<1x4x16xf32> to vector<4x16xf32>
      %52 = vector.shape_cast %24 : vector<4x16xf32> to vector<1x4x16xf32>
      tpu.vector_store %arg10[%c0_21, %c0_22, %c0_23], %52 {strides = array<i32>} : memref<1x4x16xf32, #tpu.memory_space<vmem>>, vector<1x4x16xf32>,
      %c0_24 = arith.constant 0 : index
      %c0_25 = arith.constant 0 : index
      %c0_26 = arith.constant 0 : index
      %53 = vector.load %arg9[%c0_24, %c0_25, %c0_26] : memref<1x4x16xf32, #tpu.memory_space<vmem>>, vector<1x4x16xf32>
      %54 = vector.shape_cast %53 : vector<1x4x16xf32> to vector<4x16xf32>
      %55 = arith.subf %24, %54 : vector<4x16xf32>
      %56 = arith.subf %40, %54 : vector<4x16xf32>
      %57 = arith.mulf %55, %55 : vector<4x16xf32>
      %cst_27 = arith.constant dense<0.000000e+00> : vector<4xf32>
      %58 = vector.multi_reduction <add>, %57, %cst_27 [1] : vector<4x16xf32> to vector<4xf32>
      %59 = vector.shape_cast %58 : vector<4xf32> to vector<4x1xf32>
      %60 = arith.mulf %56, %56 : vector<4x16xf32>
      %cst_28 = arith.constant dense<0.000000e+00> : vector<4xf32>
      %61 = vector.multi_reduction <add>, %60, %cst_28 [1] : vector<4x16xf32> to vector<4xf32>
      %62 = vector.shape_cast %61 : vector<4xf32> to vector<4x1xf32>
      %63 = arith.addf %59, %62 : vector<4x1xf32>
      %c0_29 = arith.constant 0 : index
      %c0_30 = arith.constant 0 : index
      %c0_31 = arith.constant 0 : index
      %64 = vector.load %arg11[%c0_29, %c0_30, %c0_31] : memref<1x4x1xf32, #tpu.memory_space<vmem>>, vector<1x4x1xf32>
      %65 = vector.shape_cast %64 : vector<1x4x1xf32> to vector<4x1xf32>
      %66 = vector.shape_cast %63 : vector<4x1xf32> to vector<1x4x1xf32>
      tpu.vector_store %arg11[%c0_29, %c0_30, %c0_31], %66 {strides = array<i32>} : memref<1x4x1xf32, #tpu.memory_space<vmem>>, vector<1x4x1xf32>,
    } else {
    }
    return
  }
  func.func @transform_0(%arg0: i32, %arg1: i32) -> (i32, i32) {
    %c0_i32 = arith.constant 0 : i32
    %c0_i32_0 = arith.constant 0 : i32
    %c0_i32_1 = arith.constant 0 : i32
    return %c0_i32, %c0_i32_0 : i32, i32
  }
  func.func @transform_1(%arg0: i32, %arg1: i32) -> (i32, i32) {
    %c0_i32 = arith.constant 0 : i32
    %c0_i32_0 = arith.constant 0 : i32
    %c0_i32_1 = arith.constant 0 : i32
    return %c0_i32, %c0_i32_0 : i32, i32
  }
  func.func @transform_2(%arg0: i32, %arg1: i32) -> (i32, i32) {
    %c0_i32 = arith.constant 0 : i32
    %c0_i32_0 = arith.constant 0 : i32
    %c0_i32_1 = arith.constant 0 : i32
    return %c0_i32, %c0_i32_0 : i32, i32
  }
  func.func @transform_3(%arg0: i32, %arg1: i32) -> (i32, i32) {
    %c0_i32 = arith.constant 0 : i32
    %c0_i32_0 = arith.constant 0 : i32
    %c0_i32_1 = arith.constant 0 : i32
    return %c0_i32, %c0_i32_0 : i32, i32
  }
  func.func @transform_4(%arg0: i32, %arg1: i32) -> (i32, i32, i32, i32) {
    %c3_i32 = arith.constant 3 : i32
    %0 = arith.muli %arg0, %c3_i32 : i32
    %1 = arith.addi %0, %arg1 : i32
    %c0_i32 = arith.constant 0 : i32
    %c0_i32_0 = arith.constant 0 : i32
    %c0_i32_1 = arith.constant 0 : i32
    %c0_i32_2 = arith.constant 0 : i32
    return %1, %c0_i32, %c0_i32_0, %c0_i32_1 : i32, i32, i32, i32
  }
  func.func @transform_5(%arg0: i32, %arg1: i32) -> (i32, i32, i32) {
    %c0_i32 = arith.constant 0 : i32
    %c0_i32_0 = arith.constant 0 : i32
    %c0_i32_1 = arith.constant 0 : i32
    return %arg0, %c0_i32, %c0_i32_0 : i32, i32, i32
  }
  func.func @transform_6(%arg0: i32, %arg1: i32) -> (i32, i32, i32) {
    %c0_i32 = arith.constant 0 : i32
    %c0_i32_0 = arith.constant 0 : i32
    %c0_i32_1 = arith.constant 0 : i32
    return %arg0, %c0_i32, %c0_i32_0 : i32, i32, i32
  }
  func.func @transform_7(%arg0: i32, %arg1: i32) -> (i32, i32, i32) {
    %c0_i32 = arith.constant 0 : i32
    %c0_i32_0 = arith.constant 0 : i32
    %c0_i32_1 = arith.constant 0 : i32
    return %arg0, %c0_i32, %c0_i32_0 : i32, i32, i32
  }
  func.func @transform_8(%arg0: i32, %arg1: i32) -> (i32, i32, i32) {
    %c0_i32 = arith.constant 0 : i32
    %c0_i32_0 = arith.constant 0 : i32
    %c0_i32_1 = arith.constant 0 : i32
    return %arg0, %c0_i32, %c0_i32_0 : i32, i32, i32
  }
  func.func @transform_9(%arg0: i32, %arg1: i32) -> (i32, i32, i32) {
    %c0_i32 = arith.constant 0 : i32
    %c0_i32_0 = arith.constant 0 : i32
    %c0_i32_1 = arith.constant 0 : i32
    return %arg0, %c0_i32, %c0_i32_0 : i32, i32, i32
  }
}

</mosaic_0001>

<bundles_post_ra>
// kernel: tpu_custom_call.1
= control target key start
LH: loop header
LB: loop body
LE: loop exit
PB: predicated region body
PF: predicated region fallthrough
CT: control target
= control target key end

     0   :  { %s2107_s0 = inlined_call_operand.hbm [shape: f32[1,3], index: 0, kind: input, shape index: {}]   ;;  %s2108_s1 = inlined_call_operand.hbm [shape: f32[1,3], index: 1, kind: input, shape index: {}]   ;;  %s2109_s2 = inlined_call_operand.vmem [shape: f32[1,3], index: 2, kind: input, shape index: {}]   ;;  %s2110_s3 = inlined_call_operand.vmem [shape: f32[1,3], index: 3, kind: input, shape index: {}]   ;;  %s2111_s4 = inlined_call_operand.hbm [shape: f32[6,4,16,16], index: 4, kind: input, shape index: {}]   ;;  %s2112_s5 = inlined_call_operand.hbm [shape: f32[2,4,16], index: 5, kind: input, shape index: {}]   ;;  %s2113_s6 = inlined_call_operand.hbm [shape: f32[2,4,16], index: 6, kind: input, shape index: {}]   ;;  %s2114_s7 = inlined_call_operand.hbm [shape: f32[2,4,16], index: 7, kind: input, shape index: {}]   ;;  %s2115_s8 = inlined_call_operand.hbm [shape: f32[2,4,16], index: 8, kind: output, shape index: {0}]   ;;  %s2116_s9 = inlined_call_operand.vmem [shape: f32[2,4,1], index: 9, kind: output, shape index: {1}]  }
   0x1   :  { %2135 = sst [smem:[#allocation41_spill]] %s2107_s0 }
   0x2   :  { %2136 = sst [smem:[#allocation42_spill]] %s2108_s1 }
   0x3   :  { %2137 = sst [smem:[#allocation43_spill]] %s2109_s2 }
   0x4   :  { %2138 = sst [smem:[#allocation44_spill]] %s2110_s3 }
   0x5   :  { %2139 = sst [smem:[#allocation45_spill]] %s2111_s4 }
   0x6   :  { %2140 = sst [smem:[#allocation46_spill]] %s2112_s5 }
   0x7   :  { %2141 = sst [smem:[#allocation47_spill]] %s2113_s6 }
   0x8   :  { %2142 = sst [smem:[#allocation48_spill]] %s2115_s8 }
   0x9   :  { %2143 = sst [smem:[#allocation49_spill]] %s2116_s9 }
   0xa   :  { %15 = vsyncpa [#allocation7], 0 }
   0xb   :  { %16 = vsyncpa [#allocation10], 0 }
   0xc   :  { %17 = vsyncpa [#allocation8], 0 }
   0xd   :  { %18 = vsyncpa [#allocation13], 0 }
   0xe   :  { %19 = vsyncpa [#allocation5], 0 }
   0xf   :  { %21 = vsyncpa [#allocation5 + $0x1], 0 }
  0x10   :  { %22 = vsyncpa [#allocation16], 0 }
  0x11   :  { %24 = vsyncpa [#allocation16 + $0x1], 0 }
  0x12   :  { %25 = vsyncpa [#allocation19], 0 }
  0x13   :  { %27 = vsyncpa [#allocation19 + $0x1], 0 }
  0x14   :  { %28 = vsyncpa [#allocation6], 0 }
  0x15   :  { %30 = vsyncpa [#allocation6 + $0x1], 0  ;;  %s1715_s30 = smov 0   ;;  %s1717_s10 = smov 0  }
  0x16   :  { %s1719_s11 = smov 0   ;;  %s1721_s12 = smov 0  }
  0x17   :  { %s1723_s13 = smov 0   ;;  %s1725_s14 = smov 0  }
  0x18   :  { %s1727_s15 = smov 0   ;;  %s1729_s16 = smov 0  }
  0x19   :  { %s1731_s17 = smov 0   ;;  %s1733_s18 = smov 0  }
  0x1a   :  { %s1735_s19 = smov 0  }
  0x1b LB: > { %2144 = sst [smem:[#allocation29_spill]] %s1616_s30  ;;  %s1769_s20 = sadd.s32 4294967295, %s1656_s19   ;;  %s1656_s19 = sphi %s1735_s19, %s36_s19   ;;  %s1652_s18 = sphi %s1733_s18, %s2199_s18   ;;  %s1648_s17 = sphi %s1731_s17, %s2191_s17   ;;  %s1644_s16 = sphi %s1729_s16, %s2198_s16   ;;  %s1640_s15 = sphi %s1727_s15, %s2190_s15   ;;  %s1636_s14 = sphi %s1725_s14, %s2197_s14   ;;  %s1632_s13 = sphi %s1723_s13, %s2196_s13   ;;  %s1628_s12 = sphi %s1721_s12, %s2195_s12   ;;  %s1624_s11 = sphi %s1719_s11, %s2194_s11   ;;  %s1620_s10 = sphi %s1717_s10, %s2193_s10   ;;  %s1616_s30 = sphi %s1715_s30, %s2189_s30  }
  0x1c   : > { %2145 = sst [smem:[#allocation30_spill]] %s1620_s10  ;;  %s1099_s21 = sadd.s32 4294967294, %s1656_s19  }
  0x1d   : > { %2146 = sst [smem:[#allocation31_spill]] %s1640_s15  ;;  %p150_p0 = scmp.ne.s32.totalorder %s1636_s14, %s1632_s13 }
  0x1e   : > { %2147 = sst [smem:[#allocation32_spill]] %s1644_s16  ;;  %p151_p1 = scmp.eq.s32.totalorder %s1656_s19, 0 }
  0x1f   : > { %2148 = sst [smem:[#allocation33_spill]] %s1648_s17  ;;  %p156_p2 = scmp.ne.s32.totalorder %s1632_s13, %s1628_s12 }
  0x20   : > { %2149 = sst [smem:[#allocation34_spill]] %s1656_s19  ;;  %p157_p3 = scmp.eq.s32.totalorder %s1769_s20, 0 }
  0x21   : > { %p1779_p4 = por %p151_p1, %p150_p0  ;;  %p176_p5 = scmp.ne.s32.totalorder %s1624_s11, %s1620_s10 }
  0x22   : > { %p1787_p6 = por %p157_p3, %p156_p2  ;;  %p182_p7 = scmp.ne.s32.totalorder %s1620_s10, %s1616_s30 }
  0x23   : > { %p1793_p8 = por %p176_p5, %p151_p1  ;;  %p258_p9 = scmp.eq.s32.totalorder %s1769_s20, 5 }
  0x24   : > { %s2151_s25 = scalar_select %p1787_p6, 1, 0 }
  0x25   : > { %p1800_p10 = por %p182_p7, %p157_p3  ;;  %p264_p11 = scmp.eq.s32.totalorder %s1099_s21, 5 }
  0x26   : > { %2152 = sst [smem:[#allocation35_spill]] %s2151_s25  ;;  %p1804_p12 = por %p258_p9, %p176_p5 }
  0x27   : > { %s2154_s27 = scalar_select %p1800_p10, 1, 0 }
  0x28   : > { %s2156_s28 = scalar_select %p1804_p12, 1, 0 }
  0x29   : > { %2155 = sst [smem:[#allocation36_spill]] %s2154_s27  ;;  %p1808_p13 = por %p264_p11, %p182_p7 }
  0x2a   : > { %2157 = sst [smem:[#allocation37_spill]] %s2156_s28  ;;  %p1205_p0 = scmp.lt.s32.totalorder %s1656_s19, 6 }
  0x2b   : > { %s2158_s29 = scalar_select %p1808_p13, 1, 0 }
  0x2c   : > { %s374_s12 = sand.u32 1, %s1656_s19   ;;  %s2124_s23 = sand.u32 1, %s1624_s11  }
  0x2d   : > { %2159 = sst [smem:[#allocation38_spill]] %s2158_s29  ;;  %p1817_p1 = pnand %p1205_p0, %p1779_p4 }
  0x2e   : > { %s1823_s21 = sshll.u32 %s2124_s23, 2  ;;  %s1826_s30 = sshll.u32 %s1652_s18, 2 }
  0x2f   : > { %s2161_s5 = sld [smem:[#allocation46_spill]]  ;;  %s378_s9 = scalar_lea.vmem [#allocation15], %s1823_s21 }
  0x30   : > { %s386_s16 = sshll.u32 %s378_s9, 4  ;;  %p1835_p2 = pnand %p1205_p0, %p1793_p8  ;;  %s387_s16 = int_to_ptr.vmem [resolvable:$true] %s386_s16 }
  0x31   : > { %s1839_s23 = scalar_lea.sflag [#allocation16], %s374_s12  ;;  %p1100_p4 = scmp.ge.s32.totalorder %s1656_s19, 1 }
  0x32   : > { %p297_p5 = scmp.lt.s32.totalorder %s1656_s19, 7  ;;  %s2163_s0 = sld [smem:[#allocation41_spill]] }
  0x33   : > { %s2165_s1 = sld [smem:[#allocation42_spill]]  ;;  %s1658_s26 = smov [#allocation4]  }
  0x34   : > { %p1849_p7 = pnand %p1100_p4, %p297_p5  ;;  %s2166_s2 = sld [smem:[#allocation43_spill]] }
  0x35   : > { %s382_s29 = scalar_lea.hbm %s2161_s5, %s1826_s30  ;;  %s2167_s3 = sld [smem:[#allocation44_spill]] }
  0x36   : > { %s384_s15 = sshll.u32 %s382_s29, 4  ;;  %p1171_p8 = pneg %p1849_p7  ;;  %s385_s15 = int_to_ptr.hbm [resolvable:$true] %s384_s15 }
  0x37   : > { %1190 = dma.hbm_to_vmem [thread:$0]  (!%p1835_p2), %s385_s15, 64, %s387_s16, %s1839_s23  }
  0x38   : > { %s309_s29 = sshll.u32 %s2163_s0, 4  ;;  %p1172_p9 = pnand %p1171_p8, %p157_p3  ;;  %s310_s29 = int_to_ptr.hbm [resolvable:$true] %s309_s29 }
  0x39   : > { %s319_s12 = sshll.u32 %s2165_s1, 4  ;;  %s1659_s1 = smov [#allocation9]   ;;  %s320_s12 = int_to_ptr.hbm [resolvable:$true] %s319_s12 }
  0x3a   : > { %s329_s8 = sshll.u32 %s2166_s2, 4  ;;  %s1660_s19 = smov [#allocation11]   ;;  %s330_s8 = int_to_ptr.vmem [resolvable:$true] %s329_s8 }
  0x3b   : > { %s339_s5 = sshll.u32 %s2167_s3, 4  ;;  %s1661_s15 = smov [#allocation12]   ;;  %s340_s5 = int_to_ptr.vmem [resolvable:$true] %s339_s5 }
  0x3c   : > { %1174 = dma.hbm_to_smem (!%p1172_p9), %s310_s29, 16, %s1658_s26, [#allocation7]  }
  0x3d   : > { %1177 = dma.hbm_to_smem (!%p1172_p9), %s320_s12, 16, %s1659_s1, [#allocation10]  }
  0x3e   : > { %1180 = dma.vmem_to_smem (!%p1172_p9), %s330_s8, 16, %s1660_s19, [#allocation8]  }
  0x3f   : > { %1183 = dma.vmem_to_smem (!%p1172_p9), %s340_s5, 16, %s1661_s15, [#allocation13]  }
  0x40   : > { %s136_s16 = smul.u32 3, %s1652_s18  ;;  %s143_s2 = sadd.s32 1, %s1636_s14 }
  0x41   : > { %s45_s27 = sadd.s32 1, %s1648_s17  ;;  %s350_s0 = sand.u32 1, %s1636_s14  }
  0x42   : > { %s137_s10 = sadd.s32 %s1648_s17, %s136_s16  ;;  %p46_p11 = scmp.ge.s32.totalorder %s45_s27, 3 }
  0x43   : > { %s1106_s28 = sshll.u32 %s350_s0, 6  ;;  %s2169_s3 = sadd.s32 1, %s1652_s18 }
  0x44   : > { %s2201_s27 = smov (%p46_p11, %s45_s27), 0  ;;  %s2203_s3 = smov (!%p46_p11, %s2169_s3), %s1652_s18 }
  0x45   : > { %2168 = sst [smem:[#allocation39_spill]] %s2201_s27  ;;  %s1144_s29 = sshll.u32 %s137_s10, 6 }
  0x46   : > { %p50_p0 = scmp.ge.s32.totalorder %s2203_s3, 2  ;;  %s2170_s4 = sld [smem:[#allocation45_spill]] }
  0x47   : > { %s354_s5 = scalar_lea.vmem [#allocation14], %s1106_s28  ;;  %s2172_s6 = sld [smem:[#allocation47_spill]] }
  0x48   : > { %s364_s26 = sshll.u32 %s354_s5, 4  ;;  %s2205_s3 = smov (%p50_p0, %s2203_s3), 0  ;;  %s365_s26 = int_to_ptr.vmem [resolvable:$true] %s364_s26 }
  0x49   : > { %2171 = sst [smem:[#allocation40_spill]] %s2205_s3  ;;  %s138_s15 = smul.u32 3, %s2205_s3 }
  0x4a   : > { %s166_s16 = ssub.s32 %s1652_s18, %s2205_s3  ;;  %s351_s25 = scalar_lea.sflag [#allocation5], %s350_s0 }
  0x4b   : > { %p167_p4 = scmp.eq.s32.totalorder %s166_s16, 0  ;;  %s139_s17 = sadd.s32 %s138_s15, %s2201_s27 }
  0x4c   : > { %s361_s12 = scalar_lea.hbm %s2170_s4, %s1144_s29  ;;  %s140_s1 = ssub.s32 %s137_s10, %s139_s17 }
  0x4d   : > { %s362_s8 = sshll.u32 %s361_s12, 4  ;;  %p141_p5 = scmp.eq.s32.totalorder %s140_s1, 0  ;;  %s363_s8 = int_to_ptr.hbm [resolvable:$true] %s362_s8 }
  0x4e   : > { %s401_s19 = scalar_lea.hbm %s2172_s6, %s1826_s30  ;;  %s2173_s12 = sadd.s32 1, %s1624_s11 }
  0x4f   : > { %s1892_s5 = scalar_select %p167_p4, %s1624_s11, %s2173_s12  }
  0x50   : > { %s1895_s4 = scalar_select %p141_p5, %s1636_s14, %s143_s2  }
  0x51   : > { %s1662_s3 = smov 128   ;;  %s1663_s16 = smov 8  }
  0x52   : > { %1187 = dma.hbm_to_vmem [thread:$0]  (!%p1817_p1), %s363_s8, 1024, %s365_s26, %s351_s25, %s1662_s3, %s1662_s3, %s1663_s16  }
  0x53   : > { %s403_s15 = sshll.u32 %s401_s19, 4  ;;  %s397_s10 = scalar_lea.vmem [#allocation17], %s1823_s21  ;;  %s404_s15 = int_to_ptr.hbm [resolvable:$true] %s403_s15 }
  0x54   : > { %s405_s17 = sshll.u32 %s397_s10, 4  ;;  %s420_s29 = scalar_lea.hbm %s2114_s7, %s1826_s30  ;;  %s406_s17 = int_to_ptr.vmem [resolvable:$true] %s405_s17 }
  0x55   : > { %1193 = dma.hbm_to_vmem [thread:$0]  (!%p1835_p2), %s404_s15, 64, %s406_s17, %s1839_s23  }
  0x56   : > { %s416_s2 = scalar_lea.vmem [#allocation18], %s1823_s21  ;;  %s422_s0 = sshll.u32 %s420_s29, 4  ;;  %s423_s0 = int_to_ptr.hbm [resolvable:$true] %s422_s0 }
  0x57   : > { %s424_s12 = sshll.u32 %s416_s2, 4  ;;  %s2174_s6 = sand.u32 1, %s1624_s11   ;;  %s425_s12 = int_to_ptr.vmem [resolvable:$true] %s424_s12 }
  0x58   : > { %s413_s27 = scalar_lea.sflag [#allocation19], %s2174_s6  ;;  %433 = sbr.rel (%p1849_p7) target bundleno = 478 (0x1de), region = 52 }
  0x59   : > { %1196 = dma.hbm_to_vmem [thread:$0]  (!%p1835_p2), %s423_s0, 64, %s425_s12, %s413_s27  }
  0x5d   : > { %1583 = dma.done.wait (%p157_p3), [#allocation7], 16  }
  0x5e   : > { %1585 = vsyncadd (%p157_p3), [#allocation7], 4294967280 }
  0x5f   : > { %1587 = dma.done.wait (%p157_p3), [#allocation10], 16  }
  0x60   : > { %1589 = vsyncadd (%p157_p3), [#allocation10], 4294967280 }
  0x61   : > { %1591 = dma.done.wait (%p157_p3), [#allocation8], 16  }
  0x62   : > { %1593 = vsyncadd (%p157_p3), [#allocation8], 4294967280 }
  0x63   : > { %1595 = dma.done.wait (%p157_p3), [#allocation13], 16  }
  0x64   : > { %1597 = vsyncadd (%p157_p3), [#allocation13], 4294967280  ;;  %s455_s6 = sand.u32 1, %s1632_s13  }
  0x65   : > { %s1120_s30 = sshll.u32 %s455_s6, 6  ;;  %s456_s22 = scalar_lea.sflag [#allocation5], %s455_s6 }
  0x66   : > { %s1931_s23 = scalar_lea.vmem [#allocation14], %s1120_s30 }
  0x67   : > { %1599 = dma.done.wait (%p1787_p6), %s456_s22, 1024  }
  0x68   : > { %1601 = vsyncadd (%p1787_p6), %s456_s22, 4294966272  ;;  %s2176_s25 = sld [smem:[#allocation30_spill]]  ;;  %s465_s21 = sand.u32 1, %s1769_s20  }
  0x69   : > { %s466_s8 = scalar_lea.sflag [#allocation16], %s465_s21 }
  0x6e   : > { %s1939_s24 = sand.u32 1, %s2176_s25  }
  0x6f   : > { %s1942_s9 = sshll.u32 %s1939_s24, 2 }
  0x70   : > { %s469_s26 = scalar_lea.vmem [#allocation15], %s1942_s9 }
  0x71   : > { %1603 = dma.done.wait (%p1800_p10), %s466_s8, 128  }
  0x72   : > { %1605 = vsyncadd (%p1800_p10), %s466_s8, 4294967168  ;;  %s479_s19 = scalar_lea.vmem [#allocation17], %s1942_s9  ;;  %s486_s16 = scalar_lea.sflag [#allocation19], %s1939_s24 }
  0x73   : > { %s489_s20 = scalar_lea.vmem [#allocation18], %s1942_s9 }
  0x74   : > { %1607 = dma.done.wait (%p1800_p10), %s486_s16, 64  }
  0x75   : > { %1609 = vsyncadd (%p1800_p10), %s486_s16, 4294967232 }
  0x76   : > { %495 = sfence }
  0x77   : > { %s2178_s15 = sld [smem:[#allocation32_spill]]  ;;  %s538_s2 = scalar_lea.vmem [#allocation20], %s1942_s9 }
  0x78   : > { %s2179_s28 = sld [smem:[#allocation49_spill]] }
  0x79   : > { %s2180_s12 = sld [smem:[#allocation31_spill]] }
  0x7d   : > { %p547_p3 = scmp.lt.s32.totalorder %s2178_s15, 1 }
  0x7f   : > { %s2207_s15 = smov (!%p547_p3, %s2178_s15), 1  ;;  %p1126_p6 = scmp.ne.s32.totalorder %s2180_s12, 0 }
  0x80   : > { %s1125_s10 = sshll.u32 %s2207_s15, 2 }
  0x81   : > { %s1961_s29 = scalar_lea.vmem %s2179_s28, %s1125_s10  ;;  %554 = sbr.rel (%p1126_p6) target bundleno = 137 (0x89), region = 88 }
  0x86   : > { %v555_v0 = vld [vmem:[%s479_s19] sm:$0xf]  ;;  %vm556_vm0 = vcmask 125952   ;;  %v1664_v1 = vmov 0.0  }
  0x87   : > { %557 = vst.msk [vmem:[#allocation2] sm:$0xf] %vm556_vm0, %v555_v0 }
  0x88   : > { %558 = vst.msk [vmem:[#allocation3] sm:$0xf] %vm556_vm0, %v1664_v1 }
  0x89 PF: > { %s2181_s0 = sld [smem:[#allocation31_spill]]  ;;  %v576_v2 = vld [vmem:[%s1931_s23 + $0x8] sm:$0xff]  ;;  %vm583_vm1 = vcmask 130048   ;;  %v578_v3 = vld [vmem:[%s1931_s23 + $0x18] sm:$0xff]  ;;  %v575_v6 = vld [vmem:[%s1931_s23] sm:$0xff]  ;;  %vm762_vm2 = vcmask 1041409  }
  0x8a   : > { %v580_v4 = vld [vmem:[%s1931_s23 + $0x28] sm:$0xff]  ;;  %1127 = vmatpush.xpose.msk.msra.mxu0 %vm583_vm1, %v576_v2  ;;  %1130 = vmatpush.xpose.msk.msra.mxu1 %vm583_vm1, %v578_v3  ;;  %v582_v5 = vld [vmem:[%s1931_s23 + $0x38] sm:$0xff]  ;;  %v577_v7 = vld [vmem:[%s1931_s23 + $0x10] sm:$0xff]  ;;  %vm765_vm3 = vcmask 1042434   ;;  %vm768_vm4 = vcmask 1043459   ;;  %vm783_vm5 = vcmask 125952  }
  0x8b   : > { %1133 = vmatpush.xpose.msk.msra.mxu2 %vm583_vm1, %v580_v4  ;;  %1136 = vmatpush.xpose.msk.msra.mxu3 %vm583_vm1, %v582_v5  ;;  %v579_v8 = vld [vmem:[%s1931_s23 + $0x20] sm:$0xff]  ;;  %v581_v9 = vld [vmem:[%s1931_s23 + $0x30] sm:$0xff] }
  0x8c   : > { %v566_v11 = vld [vmem:[%s469_s26] sm:$0xf] }
  0x8e   : > { %v564_v12 = vld [vmem:[#allocation2] sm:$0xf]  ;;  %1128 = vmatpush.xpose.msk.msra.mxu0 %vm583_vm1, %v575_v6  ;;  %1131 = vmatpush.xpose.msk.msra.mxu1 %vm583_vm1, %v577_v7 }
  0x8f   : > { %s559_s3 = sld [smem:[#allocation4 + %s2181_s0]]  ;;  %v1978_v10 = vld [vmem:[#allocation3] sm:$0xf]  ;;  %1134 = vmatpush.xpose.msk.msra.mxu2 %vm583_vm1, %v579_v8  ;;  %1137 = vmatpush.xpose.msk.msra.mxu3 %vm583_vm1, %v581_v9  ;;  %p1139_p10 = scmp.ne.s32.totalorder %s2181_s0, 2 }
  0x90   : > { %v567_v13 = vadd.f32 %v566_v11, %v1978_v10  ;;  %s560_s6 = sld [smem:[#allocation9 + %s2181_s0]] }
  0x91   : > { %s562_s30 = sld [smem:[#allocation12 + %s2181_s0]] }
  0x92   : > { %s561_s22 = sld [smem:[#allocation11 + %s2181_s0]] }
  0x95   : > { %v1987_v14 = vstv %s559_s3 }
  0x96   : > { %v569_v15 = vmul.f32 %v1987_v14, %v564_v12  ;;  %v696_v20 = vstv %s560_s6 }
  0x97   : > { %v697_v21 = vmul.f32 %v696_v20, %v1978_v10  ;;  %s563_s23 = smul.f32 2.0, %s562_s30  ;;  %v715_v25 = vstv %s562_s30 }
  0x98   : > { %v570_v16 = vadd.f32 %v569_v15, %v567_v13  ;;  %v710_v24 = vstv %s561_s22 }
  0x99   : > { %v699_v22 = vrot.slane %v697_v21, 1  ;;  %v724_v27 = vstv %s563_s23  ;;  %v700_v34 = vrot.slane %v697_v21, 2  ;;  %v701_v36 = vrot.slane %v697_v21, 3 }
  0x9a   : > { %1129 = vmatmul.msk.f32.vlgmr.msra.gmra.mxu0 %vm583_vm1, %v570_v16  ;;  %v572_v17 = vrot.slane %v570_v16, 1  ;;  %v573_v18 = vrot.slane %v570_v16, 2  ;;  %v574_v19 = vrot.slane %v570_v16, 3 }
  0x9c   : > { %1132 = vmatmul.msk.f32.vlgmr.msra.gmra.mxu1 %vm583_vm1, %v572_v17  ;;  %1135 = vmatmul.msk.f32.vlgmr.msra.gmra.mxu2 %vm583_vm1, %v573_v18 }
  0x9d   : > { %1138 = vmatmul.msk.f32.vlgmr.msra.gmra.mxu3 %vm583_vm1, %v574_v19 }
 0x117   : > { %v1998_v23 = vpop.f32.mrf.mxu0 }
 0x118   : > { %v706_v26 = vsub.f32 %v1998_v23, %v697_v21 }
 0x119   : > { %v2001_v28 = vpop.f32.mrf.mxu1 }
 0x11a   : > { %v711_v29 = vmul.f32 %v710_v24, %v706_v26  ;;  %v716_v30 = vmul.f32 %v715_v25, %v706_v26  ;;  %v707_v31 = vsub.f32 %v2001_v28, %v699_v22 }
 0x11c   : > { %v725_v32 = vsub.f32 %v716_v30, %v724_v27  ;;  %v712_v33 = vmul.f32 %v710_v24, %v707_v31  ;;  %v717_v35 = vmul.f32 %v715_v25, %v707_v31  ;;  %1306 = vtanh.f32 %v711_v29 }
 0x11d   : > { %v737_v37 = vadd.f32 %v724_v27, %v716_v30 }
 0x11e   : > { %1308 = vtanh.f32 %v725_v32  ;;  %v726_v38 = vsub.f32 %v717_v35, %v724_v27  ;;  %v738_v39 = vadd.f32 %v724_v27, %v717_v35 }
 0x11f   : > { %v2004_v40 = vpop.f32.mrf.mxu2  ;;  %1310 = vtanh.f32 %v712_v33 }
 0x120   : > { %v708_v41 = vsub.f32 %v2004_v40, %v700_v34  ;;  %v2007_v42 = vpop.f32.mrf.mxu3  ;;  %1312 = vtanh.f32 %v726_v38 }
 0x121   : > { %v709_v43 = vsub.f32 %v2007_v42, %v701_v36  ;;  %1314 = vtanh.f32 %v738_v39 }
 0x122   : > { %v713_v44 = vmul.f32 %v710_v24, %v708_v41  ;;  %v718_v45 = vmul.f32 %v715_v25, %v708_v41  ;;  %1316 = vtanh.f32 %v737_v37  ;;  %v1307_v48 = vpop.eup %1306 }
 0x123   : > { %v714_v46 = vmul.f32 %v710_v24, %v709_v43  ;;  %v719_v47 = vmul.f32 %v715_v25, %v709_v43 }
 0x124   : > { %1318 = vtanh.f32 %v713_v44  ;;  %v727_v49 = vsub.f32 %v718_v45, %v724_v27  ;;  %v739_v50 = vadd.f32 %v724_v27, %v718_v45  ;;  %v1309_v51 = vpop.eup %1308 }
 0x125   : > { %1320 = vtanh.f32 %v714_v46  ;;  %v728_v52 = vsub.f32 %v719_v47, %v724_v27  ;;  %v740_v53 = vadd.f32 %v724_v27, %v719_v47  ;;  %v1311_v54 = vpop.eup %1310  ;;  %v733_v57 = vadd.f32 %v1309_v51, %v1307_v48 }
 0x126   : > { %1322 = vtanh.f32 %v727_v49  ;;  %v1313_v55 = vpop.eup %1312 }
 0x127   : > { %1324 = vtanh.f32 %v739_v50  ;;  %v1315_v56 = vpop.eup %1314  ;;  %v734_v58 = vadd.f32 %v1313_v55, %v1311_v54 }
 0x128   : > { %1326 = vtanh.f32 %v728_v52  ;;  %v1317_v59 = vpop.eup %1316 }
 0x129   : > { %1328 = vtanh.f32 %v740_v53  ;;  %v746_v61 = vadd.f32 %v1315_v56, %v734_v58  ;;  %v745_v0 = vadd.f32 %v1317_v59, %v733_v57 }
 0x12a   : > { %v1319_v60 = vpop.eup %1318 }
 0x12b   : > { %v1321_v62 = vpop.eup %1320  ;;  %v750_v1 = vsub.f32 %v746_v61, %v2001_v28  ;;  %v776_v6 = vrot.slane %v746_v61, 7  ;;  %v749_v11 = vsub.f32 %v745_v0, %v1998_v23 }
 0x12c   : > { %v1323_v63 = vpop.eup %1322 }
 0x12d   : > { %v1325_v2 = vpop.eup %1324  ;;  %v735_v3 = vadd.f32 %v1323_v63, %v1319_v60  ;;  %v754_v5 = vmul.f32 %v750_v1, %v1987_v14  ;;  %v777_v17 = vsel %vm762_vm2, %v776_v6, %v745_v0  ;;  %v753_v22 = vmul.f32 %v749_v11, %v1987_v14 }
 0x12e   : > { %v1327_v4 = vpop.eup %1326 }
 0x12f   : > { %v1329_v7 = vpop.eup %1328  ;;  %v747_v8 = vadd.f32 %v1325_v2, %v735_v3  ;;  %v736_v9 = vadd.f32 %v1327_v4, %v1321_v62  ;;  %v761_v16 = vrot.slane %v754_v5, 7 }
 0x131   : > { %v751_v12 = vsub.f32 %v747_v8, %v2004_v40  ;;  %v778_v13 = vrot.slane %v747_v8, 6  ;;  %v748_v15 = vadd.f32 %v1329_v7, %v736_v9  ;;  %v763_v27 = vsel %vm762_vm2, %v761_v16, %v753_v22 }
 0x133   : > { %v755_v18 = vmul.f32 %v751_v12, %v1987_v14  ;;  %v779_v19 = vsel %vm765_vm3, %v778_v13, %v777_v17  ;;  %v752_v20 = vsub.f32 %v748_v15, %v2007_v42  ;;  %v780_v21 = vrot.slane %v748_v15, 5 }
 0x135   : > { %v764_v24 = vrot.slane %v755_v18, 6  ;;  %v756_v25 = vmul.f32 %v752_v20, %v1987_v14  ;;  %v781_v26 = vsel %vm768_vm4, %v780_v21, %v779_v19 }
 0x136   : > { %784 = vst.msk [vmem:[#allocation2] sm:$0xf] %vm783_vm5, %v781_v26 }
 0x137   : > { %v766_v29 = vsel %vm765_vm3, %v764_v24, %v763_v27  ;;  %v767_v30 = vrot.slane %v756_v25, 5 }
 0x138   : > { %789 = sbr.rel (%p1139_p10) target bundleno = 457 (0x1c9), region = 92 }
 0x139   : > { %v769_v31 = vsel %vm768_vm4, %v767_v30, %v766_v29 }
 0x13a   : > { %v771_v32 = vadd.f32 %v769_v31, %v1978_v10 }
 0x13c   : > { %785 = vst.msk [vmem:[#allocation3] sm:$0xf] %vm783_vm5, %v771_v32 }
 0x13d   : > { %v802_v14 = vld [vmem:[%s489_s20] sm:$0xf]  ;;  %v794_v3 = vrot.slane %v2001_v28, 7  ;;  %v796_v4 = vrot.slane %v2004_v40, 6  ;;  %v798_v6 = vrot.slane %v2007_v42, 5  ;;  %vm856_vm6 = vcmask 3072  }
 0x13e   : > { %v804_v33 = vrot.slane %v802_v14, 1  ;;  %v805_v34 = vrot.slane %v802_v14, 2  ;;  %v806_v35 = vrot.slane %v802_v14, 3  ;;  %v811_v36 = vsub.f32 %v1998_v23, %v802_v14 }
 0x13f   : > { %v815_v37 = vsub.f32 %v745_v0, %v802_v14  ;;  %v795_v5 = vsel %vm762_vm2, %v794_v3, %v1998_v23 }
 0x140   : > { %v812_v38 = vsub.f32 %v2001_v28, %v804_v33  ;;  %v813_v39 = vsub.f32 %v2004_v40, %v805_v34  ;;  %v814_v10 = vsub.f32 %v2007_v42, %v806_v35  ;;  %v816_v41 = vsub.f32 %v746_v61, %v804_v33 }
 0x141   : > { %v817_v43 = vsub.f32 %v747_v8, %v805_v34  ;;  %v818_v44 = vsub.f32 %v748_v15, %v806_v35  ;;  %v819_v45 = vmul.f32 %v811_v36, %v811_v36  ;;  %v837_v49 = vmul.f32 %v815_v37, %v815_v37 }
 0x142   : > { %v820_v46 = vmul.f32 %v812_v38, %v812_v38  ;;  %v821_v47 = vmul.f32 %v813_v39, %v813_v39  ;;  %v822_v48 = vmul.f32 %v814_v10, %v814_v10  ;;  %v838_v50 = vmul.f32 %v816_v41, %v816_v41 }
 0x143   : > { %v839_v51 = vmul.f32 %v817_v43, %v817_v43  ;;  %v840_v55 = vmul.f32 %v818_v44, %v818_v44  ;;  %v797_v7 = vsel %vm765_vm3, %v796_v4, %v795_v5 }
 0x144   : > { %v827_v52 = vrot.slane %v820_v46, 7  ;;  %v829_v53 = vrot.slane %v821_v47, 6  ;;  %v831_v54 = vrot.slane %v822_v48, 5  ;;  %v845_v56 = vrot.slane %v838_v50, 7 }
 0x145   : > { %v847_v57 = vrot.slane %v839_v51, 6  ;;  %v849_v62 = vrot.slane %v840_v55, 5  ;;  %v799_v8 = vsel %vm768_vm4, %v798_v6, %v797_v7 }
 0x146   : > { %v828_v58 = vsel %vm762_vm2, %v827_v52, %v819_v45  ;;  %v846_v60 = vsel %vm762_vm2, %v845_v56, %v837_v49  ;;  %801 = vst.msk [vmem:[%s538_s2] sm:$0xf] %vm783_vm5, %v799_v8 }
 0x147   : > { %v830_v59 = vsel %vm765_vm3, %v829_v53, %v828_v58  ;;  %v848_v0 = vsel %vm765_vm3, %v847_v57, %v846_v60 }
 0x148   : > { %v832_v61 = vsel %vm768_vm4, %v831_v54, %v830_v59  ;;  %v850_v1 = vsel %vm768_vm4, %v849_v62, %v848_v0 }
 0x149   : > { %v834_v63 = vsel %vm783_vm5, %v832_v61, 0.0  ;;  %v852_v2 = vsel %vm783_vm5, %v850_v1, 0.0 }
 0x14a   : > { %835 = vadd.xlane.f32.xlu0 %v834_v63 }
 0x152   : > { %853 = vadd.xlane.f32.xlu0 %v852_v2 }
 0x1bd   : > { %v836_v9 = vpop.xlane.xlu0 %835 }
 0x1c5   : > { %v854_v11 = vpop.xlane.xlu0 %853 }
 0x1c6   : > { %v855_v12 = vadd.f32 %v854_v11, %v836_v9 }
 0x1c8   : > { %857 = vst.msk [vmem:[%s1961_s29] sm:$0xf] %vm856_vm6, %v855_v12 }
 0x1c9 PF: > { %s2182_s25 = sld [smem:[#allocation32_spill]]  ;;  %s875_s15 = sshll.u32 %s538_s2, 4  ;;  %s876_s15 = int_to_ptr.vmem [resolvable:$true] %s875_s15 }
 0x1ca   : > { %s2184_s19 = sld [smem:[#allocation48_spill]]  ;;  %s859_s17 = scalar_lea.sflag [#allocation6], %s1939_s24 }
 0x1cf   : > { %s1141_s21 = sshll.u32 %s2182_s25, 2 }
 0x1d0   : > { %s2185_s20 = smov %s2184_s19  ;;  %s873_s16 = scalar_lea.hbm %s2184_s19, %s1141_s21 }
 0x1d1   : > { %s877_s10 = sshll.u32 %s873_s16, 4  ;;  %s1530_s0 = scalar_lea.hbm %s2185_s20, 8  ;;  %s878_s10 = int_to_ptr.hbm [resolvable:$true] %s877_s10 }
 0x1d2   : > { %s1524_s1 = sshra.s32 %s878_s10, 4  ;;  %s1525_s1 = int_to_ptr.hbm [resolvable:$true] %s1524_s1 }
 0x1d3   : > { %s1526_s28 = scalar_lea.hbm %s1525_s1, 4  ;;  %p1531_p8 = scmp.lt.s32.totalorder %s1525_s1, %s2185_s20 }
 0x1d4   : > { %p1527_p1 = scmp.ne.s32.totalorder %s1525_s1, %s1526_s28  ;;  %p1532_p9 = scmp.lt.s32.totalorder %s1530_s0, %s1526_s28 }
 0x1d6   : > { %p1528_p2 = pnand %p1527_p1, %p1804_p12  ;;  %p1533_p11 = por %p1532_p9, %p1531_p8 }
 0x1d8   : > { %p1529_p7 = pneg %p1528_p2 }
 0x1da   : > { %p1534_p0 = pnand %p1533_p11, %p1529_p7 }
 0x1dc   : > { %1537 = shalt.err (!%p1534_p0)
}
 0x1dd   : > { %1169 = dma.vmem_to_hbm [thread:$0]  (%p1804_p12), %s876_s15, 64, %s878_s10, %s859_s17  }
 0x1de PF: > { %s2186_s24 = sld [smem:[#allocation34_spill]] }
 0x1df   : > { %s2187_s9 = sld [smem:[#allocation29_spill]] }
 0x1e4   : > { %p1210_p4 = scmp.ge.s32.totalorder %s2186_s24, 2 }
 0x1e5   : > { %s892_s30 = sand.u32 1, %s2187_s9  }
 0x1e6   : > { %p1198_p5 = pnand %p1210_p4, %p1808_p13  ;;  %s893_s22 = scalar_lea.sflag [#allocation6], %s892_s30 }
 0x1e8   : > { %p1199_p3 = pneg %p1198_p5 }
 0x1ea   : > { %1611 = dma.done.wait (%p1199_p3), %s893_s22, 64  }
 0x1eb   : > { %1613 = vsyncadd (%p1199_p3), %s893_s22, 4294967232  ;;  %s36_s19 = sadd.s32 1, %s2186_s24   ;;  %s2189_s30 = sld [smem:[#allocation30_spill]] }
 0x1ec   : > { %p33_p6 = scmp.ge.s32.totalorder %s36_s19, 8   ;;  %s2190_s15 = sld [smem:[#allocation33_spill]] }
 0x1ed   : > { %s2191_s17 = sld [smem:[#allocation39_spill]]  ;;  %s2193_s10 = smov %s1624_s11 }
 0x1ee   : > { %s2192_s23 = sld [smem:[#allocation40_spill]]  ;;  %s2194_s11 = smov %s1892_s5 }
 0x1ef   : > { %s2195_s12 = smov %s1632_s13  ;;  %s2196_s13 = smov %s1636_s14 }
 0x1f0   : > { %s2197_s14 = smov %s1895_s4  ;;  %s2198_s16 = smov %s1652_s18 }
 0x1f1   :  { %35 = sbr.rel (!%p33_p6) target bundleno = 27 (0x1b), region = 172 }
 0x1f4   : > { %s2199_s18 = smov %s2192_s23 }
 0x1f6   :  { %906 = vsyncpa [#allocation5], 1 }
 0x1f7   :  { %908 = vsyncpa [#allocation5 + $0x1], 1 }
 0x1f8   :  { %909 = vsyncpa [#allocation16], 1 }
 0x1f9   :  { %911 = vsyncpa [#allocation16 + $0x1], 1 }
 0x1fa   :  { %912 = vsyncpa [#allocation19], 1 }
 0x1fb   :  { %914 = vsyncpa [#allocation19 + $0x1], 1 }
 0x1fc   :  { %915 = vsyncpa [#allocation6], 1 }
 0x1fd   :  { %917 = vsyncpa [#allocation6 + $0x1], 1 }
 0x1fe   :  { %918 = vsyncpa [#allocation7], 1 }
 0x1ff   :  { %920 = vsyncpa [#allocation7 + $0x1], 1 }
 0x200   :  { %921 = vsyncpa [#allocation10], 1 }
 0x201   :  { %922 = vsyncpa [#allocation8], 1 }
 0x202   :  { %924 = vsyncpa [#allocation8 + $0x1], 1 }
 0x203   :  { %925 = vsyncpa [#allocation13], 1 }

</bundles_post_ra>
